<compile_context>
chip_gen: v5e
topology: v5e:2x2
jax: 0.10.0
libtpu: 0.0.40
codegen_flags: <defaults>
</compile_context>

<pallas_src>
import functools

import jax
import jax.numpy as jnp
from jax.experimental import pallas as pl
from jax.experimental.pallas import tpu as pltpu


def _round_up(x, m):
    return (x + m - 1) // m * m


def _ce_kernel(h_ref, w_ref, tgt_ref, loss_ref, m_sc, l_sc, t_sc, *,
               tn, tv, n_valid, v_valid, mask_rows, mask_cols):
    """Fused lm-head matmul + streaming log-softmax cross-entropy.

    grid = (row tiles, vocab tiles); vocab is the inner (reduction) axis.
      h_ref:    (tn, D)  bf16   hidden-state row tile
      w_ref:    (D, tv)  bf16   lm-head weight vocab tile
      tgt_ref:  (tn, 1)  i32    target token ids for this row tile
      loss_ref: (1, 8, 128) f32 lane-dense partial NLL sum for this row tile
      m_sc/l_sc/t_sc: (tn, 1) f32 running max / exp-sum / target logit
    """
    i = pl.program_id(0)
    j = pl.program_id(1)

    @pl.when(j == 0)
    def _init():
        m_sc[...] = jnp.full(m_sc.shape, -jnp.inf, m_sc.dtype)
        l_sc[...] = jnp.zeros(l_sc.shape, l_sc.dtype)
        t_sc[...] = jnp.zeros(t_sc.shape, t_sc.dtype)

    # MXU matmul: bf16 operands, f32 accumulation.
    logits = jnp.dot(h_ref[...], w_ref[...],
                     preferred_element_type=jnp.float32)            # (tn, tv)

    col = jax.lax.broadcasted_iota(jnp.int32, (tn, tv), 1) + j * tv
    if mask_cols:
        logits_sm = jnp.where(col < v_valid, logits, -jnp.inf)
    else:
        logits_sm = logits

    # Online (flash-softmax style) log-sum-exp update.
    m_prev = m_sc[...]
    m_new = jnp.maximum(m_prev, jnp.max(logits_sm, axis=-1, keepdims=True))
    l_sc[...] = (jnp.exp(m_prev - m_new) * l_sc[...]
                 + jnp.sum(jnp.exp(logits_sm - m_new), axis=-1, keepdims=True))
    m_sc[...] = m_new

    # Target-logit pick fused into the same pass (exactly one vocab tile hits).
    t_sc[...] += jnp.sum(jnp.where(col == tgt_ref[...], logits, 0.0),
                         axis=-1, keepdims=True)

    @pl.when(j == pl.num_programs(1) - 1)
    def _finalize():
        nll = (m_sc[...] + jnp.log(l_sc[...])) - t_sc[...]           # (tn, 1)
        if mask_rows:
            row = jax.lax.broadcasted_iota(jnp.int32, (tn, 1), 0) + i * tn
            nll = jnp.where(row < n_valid, nll, 0.0)
        # Lane-dense partial-sum block (avoids masked (N,1) partial stores).
        loss_ref[...] = jnp.zeros(loss_ref.shape, jnp.float32) + jnp.sum(nll)


# Row tile: large enough that the weight stream becomes compute-bound.
_TN_MAX = 512
# Vocab tile: keeps bf16 h/w tiles + the (tn, tv) f32 logits temp well in VMEM.
_TV_MAX = 2048


@jax.jit
def cross_entropy_loss(hidden, lm_head_w, targets):
    """Mean cross-entropy over all (batch*seq) rows via the fused Pallas kernel.

    Matches torch.nn.functional.cross_entropy(logits.flatten(0,1), tgt.flatten())
    with reduction='mean'.
    # TODO(synk): PyTorch's ignore_index=-100 is unused by this module's
    # dataloader targets and is not implemented.
    """
    n, d = hidden.shape
    d2, v = lm_head_w.shape
    assert d == d2

    tn = min(_TN_MAX, _round_up(n, 8))
    n_pad = _round_up(n, tn)
    tv = min(_TV_MAX, _round_up(v, 128))
    v_pad = _round_up(v, tv)

    # bf16 MXU operands (softmax math stays f32 inside the kernel).
    h = hidden.astype(jnp.bfloat16)
    w = lm_head_w.astype(jnp.bfloat16)
    tgt = targets.reshape(-1).astype(jnp.int32)

    if n_pad != n:
        h = jnp.pad(h, ((0, n_pad - n), (0, 0)))
        tgt = jnp.pad(tgt, (0, n_pad - n))
    if v_pad != v:
        w = jnp.pad(w, ((0, 0), (0, v_pad - v)))
    tgt2d = tgt.reshape(n_pad, 1)

    n_row_tiles = n_pad // tn
    n_vocab_tiles = v_pad // tv

    kernel = functools.partial(
        _ce_kernel, tn=tn, tv=tv, n_valid=n, v_valid=v,
        mask_rows=(n_pad != n), mask_cols=(v_pad != v))

    # VMEM budget: double-buffered bf16 h/w/tgt/out streams + f32 logits temp
    # + scratch, with 2x headroom; clamped so a v7x (64 MiB physical) config
    # stays legal on every generation.
    vmem_est = (2 * tn * d * 2 + 2 * d * tv * 2          # bf16 h / w tiles
                + 2 * tn * 4 + 2 * 8 * 128 * 4           # tgt / out tiles
                + tn * tv * 4 + 3 * tn * 4)              # f32 logits + scratch
    vmem_limit = int(min(max(2 * vmem_est, 8 << 20), 48 << 20))

    partial_sums = pl.pallas_call(
        kernel,
        out_shape=jax.ShapeDtypeStruct((n_row_tiles, 8, 128), jnp.float32),
        grid_spec=pltpu.PrefetchScalarGridSpec(
            num_scalar_prefetch=0,
            grid=(n_row_tiles, n_vocab_tiles),
            in_specs=[
                pl.BlockSpec((tn, d), lambda i, j: (i, 0)),
                # NOTE: if weight-tile DMA is still exposed after tiling,
                # add pipeline_mode=pl.Buffered(3) here (budget VMEM on v7x).
                pl.BlockSpec((d, tv), lambda i, j: (0, j)),
                pl.BlockSpec((tn, 1), lambda i, j: (i, 0)),
            ],
            out_specs=pl.BlockSpec((1, 8, 128), lambda i, j: (i, 0, 0)),
            scratch_shapes=[
                pltpu.VMEM((tn, 1), jnp.float32),   # running max m
                pltpu.VMEM((tn, 1), jnp.float32),   # running exp-sum l
                pltpu.VMEM((tn, 1), jnp.float32),   # target logit
            ]),
        compiler_params=pltpu.CompilerParams(
            dimension_semantics=("parallel", "arbitrary"),
            vmem_limit_bytes=vmem_limit),
    )(h, w, tgt2d)

    # Tiny cross-row-tile reduction; exact mean = sum(NLL) / N.
    return jnp.sum(partial_sums[:, 0, 0]) / n


def tiny_model_forward(params, input_ids):
    """Tiny GPT-2-like trunk (glue, plain JAX): tok-emb + pos-emb -> hidden.

    The heavy part (lm-head matmul + softmax CE) runs in the Pallas kernel.
    """
    b, t = input_ids.shape
    tok = params["tok_emb"][input_ids]           # (B, T, D)
    pos = params["pos_emb"][:t][None, :, :]      # (1, T, D)
    hidden = tok + pos                           # (B, T, D)
    return hidden.reshape(b * t, -1)             # flatten(0,1) like the module


def train_forward(params, train_batches, val_batches, num_epochs=1,
                  evaluation_frequency=2):
    """Mirrors Train.forward loop structure (loss tracking only).

    # TODO(synk): AdamW optimizer step, loss.backward(), DataLoader shuffling,
    # tokenizer encode/decode and top-k/multinomial sampling are host-side /
    # autodiff logic with no clean Pallas equivalent and are not implemented.
    """
    train_losses, validation_losses, track_tokens_seen = [], [], []
    tokens_seen = 0
    num_iterations = -1
    loss = jnp.float32(0.0)
    for _ in range(num_epochs):
        for input_batch, target_batch in train_batches:
            hidden = tiny_model_forward(params, input_batch)
            loss = cross_entropy_loss(hidden, params["lm_head"],
                                      target_batch.reshape(-1))
            tokens_seen += input_batch.size
            num_iterations += 1
            if num_iterations % evaluation_frequency == 0:
                def eval_loss(batches):
                    tot = 0.0
                    for ib, tb in batches:
                        h = tiny_model_forward(params, ib)
                        tot += float(cross_entropy_loss(
                            h, params["lm_head"], tb.reshape(-1)))
                    return tot / max(len(batches), 1)
                train_losses.append(eval_loss(train_batches))
                validation_losses.append(eval_loss(val_batches))
                track_tokens_seen.append(tokens_seen)
    return train_losses, validation_losses, track_tokens_seen, loss


if __name__ == "__main__":
    # Small shapes consistent with the module's forward:
    # batch=2, max_context_length(seq)=8, hidden=32, vocab=128.
    B, T, D, V = 2, 8, 32, 128
    key = jax.random.PRNGKey(0)
    k_tok, k_pos, k_head, k_ids, k_tgt, k_ids2, k_tgt2 = jax.random.split(key, 7)

    params = {
        "tok_emb": jax.random.normal(k_tok, (V, D), jnp.float32) * 0.02,
        "pos_emb": jax.random.normal(k_pos, (T, D), jnp.float32) * 0.02,
        "lm_head": jax.random.normal(k_head, (D, V), jnp.float32) * 0.02,
    }

    def make_batch(ki, kt):
        ids = jax.random.randint(ki, (B, T), 0, V, dtype=jnp.int32)
        tgt = jax.random.randint(kt, (B, T), 0, V, dtype=jnp.int32)
        return ids, tgt

    train_batches = [make_batch(k_ids, k_tgt)]
    val_batches = [make_batch(k_ids2, k_tgt2)]

    tr_losses, va_losses, toks, last_loss = train_forward(
        params, train_batches, val_batches, num_epochs=1,
        evaluation_frequency=2)
    jax.block_until_ready(last_loss)

    # --- Check 1: kernel vs bf16-matmul reference (identical numerics path). ---
    ib, tb = train_batches[0]
    h = tiny_model_forward(params, ib)
    logits_bf = jnp.dot(h.astype(jnp.bfloat16),
                        params["lm_head"].astype(jnp.bfloat16),
                        preferred_element_type=jnp.float32)
    ref_bf = -jnp.mean(jax.nn.log_softmax(logits_bf, axis=-1)[
        jnp.arange(B * T), tb.reshape(-1)])
    assert abs(float(last_loss) - float(ref_bf)) < 2e-3, (
        f"bf16-ref mismatch: {float(last_loss)} vs {float(ref_bf)}")

    # --- Check 2: semantic check vs full-f32 torch-style cross_entropy. ---
    logits32 = h @ params["lm_head"]
    ref_f32 = -jnp.mean(jax.nn.log_softmax(logits32, axis=-1)[
        jnp.arange(B * T), tb.reshape(-1)])
    assert abs(float(last_loss) - float(ref_f32)) < 5e-2, (
        f"f32-ref mismatch: {float(last_loss)} vs {float(ref_f32)}")

    # --- Check 3: exercise the row/vocab padding + masking paths. ---
    k1, k2, k3 = jax.random.split(jax.random.PRNGKey(1), 3)
    h2 = jax.random.normal(k1, (20, D), jnp.float32) * 0.5    # 20 rows (pad -> 24)
    w2 = jax.random.normal(k2, (D, 200), jnp.float32) * 0.5   # 200 vocab (pad -> 256)
    t2 = jax.random.randint(k3, (20,), 0, 200, dtype=jnp.int32)
    loss2 = cross_entropy_loss(h2, w2, t2)
    jax.block_until_ready(loss2)
    logits2 = jnp.dot(h2.astype(jnp.bfloat16), w2.astype(jnp.bfloat16),
                      preferred_element_type=jnp.float32)
    ref2 = -jnp.mean(jax.nn.log_softmax(logits2, axis=-1)[jnp.arange(20), t2])
    assert abs(float(loss2) - float(ref2)) < 2e-3, (
        f"padded-case mismatch: {float(loss2)} vs {float(ref2)}")

    print("KERNEL_OK")
</pallas_src>

<mosaic_0001>
module attributes {stable_mosaic.version = 11 : i64} {
  func.func @_ce_kernel(%arg0: i32, %arg1: i32, %arg2: memref<16x32xbf16, #tpu.memory_space<vmem>>, %arg3: memref<32x128xbf16, #tpu.memory_space<vmem>>, %arg4: memref<16x1xi32, #tpu.memory_space<vmem>>, %arg5: memref<1x8x128xf32, #tpu.memory_space<vmem>>, %arg6: memref<16x1xf32, #tpu.memory_space<vmem>>, %arg7: memref<16x1xf32, #tpu.memory_space<vmem>>, %arg8: memref<16x1xf32, #tpu.memory_space<vmem>>) attributes {dimension_semantics = [#tpu.dimension_semantics<parallel>, #tpu.dimension_semantics<arbitrary>], iteration_bounds = array<i64: 1, 1>, scalar_prefetch = 0 : i64, scratch_operands = 3 : i64, tpu.core_type = #tpu.core_type<tc>, window_params = [{transform_indices = @transform_0, window_bounds = array<i64: 16, 32>}, {transform_indices = @transform_1, window_bounds = array<i64: 32, 128>}, {transform_indices = @transform_2, window_bounds = array<i64: 16, 1>}, {transform_indices = @transform_3, window_bounds = array<i64: 1, 8, 128>}]} {
    %c0_i32 = arith.constant 0 : i32
    %0 = arith.cmpi eq, %arg1, %c0_i32 : i32
    %1 = arith.extui %0 : i1 to i32
    %c0_i32_0 = arith.constant 0 : i32
    %2 = arith.cmpi ne, %1, %c0_i32_0 : i32
    scf.if %2 {
      %cst_24 = arith.constant 0xFF800000 : f32
      %39 = vector.broadcast %cst_24 : f32 to vector<16x1xf32>
      %c0_25 = arith.constant 0 : index
      %c0_26 = arith.constant 0 : index
      %40 = vector.load %arg6[%c0_25, %c0_26] : memref<16x1xf32, #tpu.memory_space<vmem>>, vector<16x1xf32>
      tpu.vector_store %arg6[%c0_25, %c0_26], %39 {strides = array<i32>} : memref<16x1xf32, #tpu.memory_space<vmem>>, vector<16x1xf32>,
      %cst_27 = arith.constant 0.000000e+00 : f32
      %41 = vector.broadcast %cst_27 : f32 to vector<16x1xf32>
      %c0_28 = arith.constant 0 : index
      %c0_29 = arith.constant 0 : index
      %42 = vector.load %arg7[%c0_28, %c0_29] : memref<16x1xf32, #tpu.memory_space<vmem>>, vector<16x1xf32>
      tpu.vector_store %arg7[%c0_28, %c0_29], %41 {strides = array<i32>} : memref<16x1xf32, #tpu.memory_space<vmem>>, vector<16x1xf32>,
      %cst_30 = arith.constant 0.000000e+00 : f32
      %43 = vector.broadcast %cst_30 : f32 to vector<16x1xf32>
      %c0_31 = arith.constant 0 : index
      %c0_32 = arith.constant 0 : index
      %44 = vector.load %arg8[%c0_31, %c0_32] : memref<16x1xf32, #tpu.memory_space<vmem>>, vector<16x1xf32>
      tpu.vector_store %arg8[%c0_31, %c0_32], %43 {strides = array<i32>} : memref<16x1xf32, #tpu.memory_space<vmem>>, vector<16x1xf32>,
    } else {
    }
    %c0 = arith.constant 0 : index
    %c0_1 = arith.constant 0 : index
    %3 = vector.load %arg2[%c0, %c0_1] : memref<16x32xbf16, #tpu.memory_space<vmem>>, vector<16x32xbf16>
    %c0_2 = arith.constant 0 : index
    %c0_3 = arith.constant 0 : index
    %4 = vector.load %arg3[%c0_2, %c0_3] : memref<32x128xbf16, #tpu.memory_space<vmem>>, vector<32x128xbf16>
    %cst = arith.constant dense<0.000000e+00> : vector<16x128xf32>
    %5 = tpu.matmul %3, %4, %cst {dimension_numbers = #tpu.dot_dimension_numbers<[1], [0], [0], [1], [0, 0, 1, 1], [], []>} : vector<16x32xbf16>, vector<32x128xbf16>, vector<16x128xf32> -> vector<16x128xf32>
    %6 = tpu.iota {dimensions = array<i32: 1>} : vector<16x128xi32>
    %c128_i32 = arith.constant 128 : i32
    %7 = arith.muli %arg1, %c128_i32 : i32
    %8 = vector.broadcast %7 : i32 to vector<16x128xi32>
    %9 = arith.addi %6, %8 : vector<16x128xi32>
    %c0_4 = arith.constant 0 : index
    %c0_5 = arith.constant 0 : index
    %10 = vector.load %arg6[%c0_4, %c0_5] : memref<16x1xf32, #tpu.memory_space<vmem>>, vector<16x1xf32>
    %cst_6 = arith.constant dense<0xFF800000> : vector<16xf32>
    %11 = vector.multi_reduction <maximumf>, %5, %cst_6 [1] : vector<16x128xf32> to vector<16xf32>
    %12 = vector.shape_cast %11 : vector<16xf32> to vector<16x1xf32>
    %13 = arith.maximumf %10, %12 : vector<16x1xf32>
    %14 = arith.subf %10, %13 : vector<16x1xf32>
    %15 = math.exp %14 : vector<16x1xf32>
    %c0_7 = arith.constant 0 : index
    %c0_8 = arith.constant 0 : index
    %16 = vector.load %arg7[%c0_7, %c0_8] : memref<16x1xf32, #tpu.memory_space<vmem>>, vector<16x1xf32>
    %17 = arith.mulf %15, %16 : vector<16x1xf32>
    %18 = vector.broadcast %13 : vector<16x1xf32> to vector<16x128xf32>
    %19 = arith.subf %5, %18 : vector<16x128xf32>
    %20 = math.exp %19 : vector<16x128xf32>
    %cst_9 = arith.constant dense<0.000000e+00> : vector<16xf32>
    %21 = vector.multi_reduction <add>, %20, %cst_9 [1] : vector<16x128xf32> to vector<16xf32>
    %22 = vector.shape_cast %21 : vector<16xf32> to vector<16x1xf32>
    %23 = arith.addf %17, %22 : vector<16x1xf32>
    %c0_10 = arith.constant 0 : index
    %c0_11 = arith.constant 0 : index
    %24 = vector.load %arg7[%c0_10, %c0_11] : memref<16x1xf32, #tpu.memory_space<vmem>>, vector<16x1xf32>
    tpu.vector_store %arg7[%c0_10, %c0_11], %23 {strides = array<i32>} : memref<16x1xf32, #tpu.memory_space<vmem>>, vector<16x1xf32>,
    %c0_12 = arith.constant 0 : index
    %c0_13 = arith.constant 0 : index
    %25 = vector.load %arg6[%c0_12, %c0_13] : memref<16x1xf32, #tpu.memory_space<vmem>>, vector<16x1xf32>
    tpu.vector_store %arg6[%c0_12, %c0_13], %13 {strides = array<i32>} : memref<16x1xf32, #tpu.memory_space<vmem>>, vector<16x1xf32>,
    %c0_14 = arith.constant 0 : index
    %c0_15 = arith.constant 0 : index
    %26 = vector.load %arg8[%c0_14, %c0_15] : memref<16x1xf32, #tpu.memory_space<vmem>>, vector<16x1xf32>
    %c0_16 = arith.constant 0 : index
    %c0_17 = arith.constant 0 : index
    %27 = vector.load %arg4[%c0_16, %c0_17] : memref<16x1xi32, #tpu.memory_space<vmem>>, vector<16x1xi32>
    %28 = vector.broadcast %27 : vector<16x1xi32> to vector<16x128xi32>
    %29 = arith.cmpi eq, %9, %28 : vector<16x128xi32>
    %cst_18 = arith.constant 0.000000e+00 : f32
    %30 = vector.broadcast %cst_18 : f32 to vector<16x128xf32>
    %31 = arith.select %29, %5, %30 : vector<16x128xi1>, vector<16x128xf32>
    %cst_19 = arith.constant dense<0.000000e+00> : vector<16xf32>
    %32 = vector.multi_reduction <add>, %31, %cst_19 [1] : vector<16x128xf32> to vector<16xf32>
    %33 = vector.shape_cast %32 : vector<16xf32> to vector<16x1xf32>
    %34 = arith.addf %26, %33 : vector<16x1xf32>
    %c0_20 = arith.constant 0 : index
    %c0_21 = arith.constant 0 : index
    %35 = vector.load %arg8[%c0_20, %c0_21] : memref<16x1xf32, #tpu.memory_space<vmem>>, vector<16x1xf32>
    tpu.vector_store %arg8[%c0_20, %c0_21], %34 {strides = array<i32>} : memref<16x1xf32, #tpu.memory_space<vmem>>, vector<16x1xf32>,
    %c0_i32_22 = arith.constant 0 : i32
    %36 = arith.cmpi eq, %arg1, %c0_i32_22 : i32
    %37 = arith.extui %36 : i1 to i32
    %c0_i32_23 = arith.constant 0 : i32
    %38 = arith.cmpi ne, %37, %c0_i32_23 : i32
    scf.if %38 {
      %c0_24 = arith.constant 0 : index
      %c0_25 = arith.constant 0 : index
      %39 = vector.load %arg6[%c0_24, %c0_25] : memref<16x1xf32, #tpu.memory_space<vmem>>, vector<16x1xf32>
      %c0_26 = arith.constant 0 : index
      %c0_27 = arith.constant 0 : index
      %40 = vector.load %arg7[%c0_26, %c0_27] : memref<16x1xf32, #tpu.memory_space<vmem>>, vector<16x1xf32>
      %41 = math.log %40 : vector<16x1xf32>
      %42 = arith.addf %39, %41 : vector<16x1xf32>
      %c0_28 = arith.constant 0 : index
      %c0_29 = arith.constant 0 : index
      %43 = vector.load %arg8[%c0_28, %c0_29] : memref<16x1xf32, #tpu.memory_space<vmem>>, vector<16x1xf32>
      %44 = arith.subf %42, %43 : vector<16x1xf32>
      %cst_30 = arith.constant 0.000000e+00 : f32
      %45 = vector.broadcast %cst_30 : f32 to vector<1x8x128xf32>
      %46 = vector.shape_cast %44 : vector<16x1xf32> to vector<1x16x1xf32>
      %cst_31 = arith.constant dense<0.000000e+00> : vector<1xf32>
      %47 = vector.multi_reduction <add>, %46, %cst_31 [1, 2] : vector<1x16x1xf32> to vector<1xf32>
      %48 = vector.shape_cast %47 : vector<1xf32> to vector<1x1x1xf32>
      %49 = vector.extract %48[0, 0, 0] : f32 from vector<1x1x1xf32>
      %50 = vector.broadcast %49 : f32 to vector<1x8x128xf32>
      %51 = arith.addf %45, %50 : vector<1x8x128xf32>
      %c0_32 = arith.constant 0 : index
      %c0_33 = arith.constant 0 : index
      %c0_34 = arith.constant 0 : index
      %52 = vector.load %arg5[%c0_32, %c0_33, %c0_34] : memref<1x8x128xf32, #tpu.memory_space<vmem>>, vector<1x8x128xf32>
      tpu.vector_store %arg5[%c0_32, %c0_33, %c0_34], %51 {strides = array<i32>} : memref<1x8x128xf32, #tpu.memory_space<vmem>>, vector<1x8x128xf32>,
    } else {
    }
    return
  }
  func.func @transform_0(%arg0: i32, %arg1: i32) -> (i32, i32) {
    %c0_i32 = arith.constant 0 : i32
    %c0_i32_0 = arith.constant 0 : i32
    return %arg0, %c0_i32 : i32, i32
  }
  func.func @transform_1(%arg0: i32, %arg1: i32) -> (i32, i32) {
    %c0_i32 = arith.constant 0 : i32
    %c0_i32_0 = arith.constant 0 : i32
    return %c0_i32, %arg1 : i32, i32
  }
  func.func @transform_2(%arg0: i32, %arg1: i32) -> (i32, i32) {
    %c0_i32 = arith.constant 0 : i32
    %c0_i32_0 = arith.constant 0 : i32
    return %arg0, %c0_i32 : i32, i32
  }
  func.func @transform_3(%arg0: i32, %arg1: i32) -> (i32, i32, i32) {
    %c0_i32 = arith.constant 0 : i32
    %c0_i32_0 = arith.constant 0 : i32
    %c0_i32_1 = arith.constant 0 : i32
    return %arg0, %c0_i32, %c0_i32_0 : i32, i32, i32
  }
}

</mosaic_0001>

<bundles_post_ra>
// kernel: cross_entropy_loss.1
= control target key start
LH: loop header
LB: loop body
LE: loop exit
PB: predicated region body
PF: predicated region fallthrough
CT: control target
= control target key end

     0   :  { %v211_v1 = vmov 0   ;;  %vm49_vm0 = vcmask 261120   ;;  %vm19_vm1 = vcmask 7168   ;;  %v212_v6 = vmov -inf   ;;  %s266_s1 = inlined_call_operand.vmem [shape: bf16[32,128], index: 1, kind: input, shape index: {}]   ;;  %s267_s2 = inlined_call_operand.vmem [shape: s32[16,1], index: 2, kind: input, shape index: {}]   ;;  %s268_s0 = inlined_call_operand.vmem [shape: bf16[16,32], index: 0, kind: input, shape index: {}]   ;;  %s269_s3 = inlined_call_operand.vmem [shape: f32[1,8,128], index: 3, kind: output, shape index: {}]  }
   0x1   :  { %v190_v0 = vld [vmem:[%s266_s1 + $0x8] sm:$0xff]  ;;  %197 = vset.pattern.permute.xlu2 %v211_v1  ;;  %196 = vset.pattern.permute.xlu1 %v211_v1  ;;  %v119_v2 = vld [vmem:[%s267_s2] sm:$0xff]  ;;  %20 = vst.msk [vmem:[#allocation2] sm:$0xff] %vm19_vm1, %v212_v6  ;;  %v67_v7 = vlaneseq  ;;  %v213_v13 = vmov 0.0  }
   0x2   :  { %198 = vset.pattern.permute.xlu0 %v211_v1  ;;  %59 = vmatpush.bf16.msra.mxu0 %v190_v0  ;;  %v189_v3 = vld [vmem:[%s266_s1] sm:$0xff]  ;;  %v120_v5 = vld [vmem:[%s267_s2 + $0x8] sm:$0xff]  ;;  %21 = vst.msk [vmem:[#allocation2 + $0x8] sm:$0xff] %vm19_vm1, %v212_v6 }
   0x3   :  { %122 = vperm.xlu2 %197, %v119_v2   ;;  %v188_v4 = vld [vmem:[%s268_s0] sm:$0xff]  ;;  %v68_v8 = vand.u32 127, %v67_v7  ;;  %24 = vst.msk [vmem:[#allocation4] sm:$0xff] %vm19_vm1, %v213_v13 }
   0x4   :  { %22 = vst.msk [vmem:[#allocation3] sm:$0xff] %vm19_vm1, %v213_v13 }
   0x5   :  { %23 = vst.msk [vmem:[#allocation3 + $0x8] sm:$0xff] %vm19_vm1, %v213_v13 }
   0x6   :  { %60 = vmatpush.bf16.msra.mxu0 %v189_v3  ;;  %25 = vst.msk [vmem:[#allocation4 + $0x8] sm:$0xff] %vm19_vm1, %v213_v13 }
   0x8   :  { %v72_v15 = vld [vmem:[#allocation2] sm:$0xff] }
   0x9   :  { %187 = vmatmul.msk.bf16.vlgmr.msra.gmra.mxu0 %vm49_vm0, %v188_v4  ;;  %v73_v22 = vld [vmem:[#allocation2 + $0x8] sm:$0xff] }
   0xa   :  { %v117_v16 = vld [vmem:[#allocation4] sm:$0xff] }
   0xb   :  { %125 = vperm.xlu2 %197, %v120_v5   ;;  %v86_v38 = vld [vmem:[#allocation3] sm:$0xff] }
   0xc   :  { %v87_v43 = vld [vmem:[#allocation3 + $0x8] sm:$0xff] }
   0xd   :  { %v118_v44 = vld [vmem:[#allocation4 + $0x8] sm:$0xff] }
  0x5d   :  { %v123_v9 = vpop.permute.xlu2 %122 }
  0x5e   :  { %vm127_vm2 = vcmp.eq.s32.totalorder %v68_v8, %v123_v9 }
  0x65   :  { %v126_v14 = vpop.permute.xlu2 %125 }
  0x66   :  { %vm128_vm3 = vcmp.eq.s32.totalorder %v68_v8, %v126_v14 }
  0x86   :  { %v62_v10 = vpop.f32.mrf.mxu0 }
  0x87   :  { %74 = vmax.xlane.f32.xlu0 %v62_v10  ;;  %v129_v11 = vsel %vm127_vm2, %v62_v10, 0.0 }
  0x88   :  { %131 = vadd.xlane.f32.xlu2 %v129_v11 }
  0x8e   :  { %v64_v12 = vpop.f32.mrf.mxu0 }
  0x8f   :  { %76 = vmax.xlane.f32.xlu0 %v64_v12  ;;  %v130_v34 = vsel %vm128_vm3, %v64_v12, 0.0 }
  0xfa   :  { %v75_v17 = vpop.xlane.xlu0 %74 }
  0xfb   :  { %v78_v18 = vmax.f32 %v72_v15, %v75_v17  ;;  %v132_v19 = vpop.xlane.xlu2 %131 }
  0xfc   :  { %v135_v20 = vadd.f32 %v132_v19, %v117_v16 }
  0xfd   :  { %v80_v21 = vsub.f32 %v72_v15, %v78_v18  ;;  %115 = vst.msk [vmem:[#allocation2] sm:$0xff] %vm19_vm1, %v78_v18  ;;  %92 = vperm.xlu1 %196, %v78_v18  }
  0xfe   :  { %137 = vst.msk [vmem:[#allocation4] sm:$0xff] %vm19_vm1, %v135_v20 }
  0xff   :  { %v82_v35 = vmul.f32 1.442695, %v80_v21 }
 0x102   :  { %v77_v23 = vpop.xlane.xlu0 %76 }
 0x103   :  { %v79_v24 = vmax.f32 %v73_v22, %v77_v23 }
 0x104   :  { %v142_v54 = vld [vmem:[#allocation2] sm:$0xff] }
 0x105   :  { %v81_v25 = vsub.f32 %v73_v22, %v79_v24  ;;  %116 = vst.msk [vmem:[#allocation2 + $0x8] sm:$0xff] %vm19_vm1, %v79_v24  ;;  %97 = vperm.xlu1 %196, %v79_v24   ;;  %v152_v59 = vld [vmem:[#allocation4] sm:$0xff] }
 0x107   :  { %v84_v36 = vmul.f32 1.442695, %v81_v25 }
 0x10c   :  { %v143_v58 = vld [vmem:[#allocation2 + $0x8] sm:$0xff] }
 0x16f   :  { %v93_v26 = vpop.permute.xlu1 %92 }
 0x170   :  { %v100_v27 = vsub.f32 %v62_v10, %v93_v26 }
 0x172   :  { %v102_v28 = vmul.f32 1.442695, %v100_v27 }
 0x174   :  { %199 = vpow2.f32 %v102_v28 }
 0x177   :  { %v98_v29 = vpop.permute.xlu1 %97 }
 0x178   :  { %v101_v30 = vsub.f32 %v64_v12, %v98_v29 }
 0x17a   :  { %v200_v31 = vpop.eup %199  ;;  %v104_v32 = vmul.f32 1.442695, %v101_v30 }
 0x17b   :  { %106 = vadd.xlane.f32.xlu0 %v200_v31 }
 0x17c   :  { %201 = vpow2.f32 %v104_v32 }
 0x17d   :  { %203 = vpow2.f32 %v82_v35 }
 0x17e   :  { %205 = vpow2.f32 %v84_v36 }
 0x182   :  { %v202_v33 = vpop.eup %201 }
 0x183   :  { %108 = vadd.xlane.f32.xlu1 %v202_v33  ;;  %133 = vadd.xlane.f32.xlu0 %v130_v34  ;;  %v204_v37 = vpop.eup %203 }
 0x184   :  { %v88_v39 = vmul.f32 %v204_v37, %v86_v38  ;;  %v206_v42 = vpop.eup %205 }
 0x185   :  { %v89_v45 = vmul.f32 %v206_v42, %v87_v43 }
 0x1ee   :  { %v107_v40 = vpop.xlane.xlu0 %106 }
 0x1ef   :  { %v110_v41 = vadd.f32 %v107_v40, %v88_v39 }
 0x1f1   :  { %113 = vst.msk [vmem:[#allocation3] sm:$0xff] %vm19_vm1, %v110_v41 }
 0x1f6   :  { %v109_v46 = vpop.xlane.xlu1 %108  ;;  %v134_v47 = vpop.xlane.xlu0 %133 }
 0x1f7   :  { %v111_v48 = vadd.f32 %v109_v46, %v89_v45  ;;  %v136_v49 = vadd.f32 %v134_v47, %v118_v44 }
 0x1f8   :  { %v144_v50 = vld [vmem:[#allocation3] sm:$0xff] }
 0x1f9   :  { %114 = vst.msk [vmem:[#allocation3 + $0x8] sm:$0xff] %vm19_vm1, %v111_v48  ;;  %207 = vlog2.f32 %v144_v50 }
 0x1fa   :  { %138 = vst.msk [vmem:[#allocation4 + $0x8] sm:$0xff] %vm19_vm1, %v136_v49 }
 0x1ff   :  { %v208_v51 = vpop.eup %207 }
 0x200   :  { %v145_v52 = vld [vmem:[#allocation3 + $0x8] sm:$0xff]  ;;  %v147_v53 = vmul.f32 0.6931472, %v208_v51 }
 0x201   :  { %209 = vlog2.f32 %v145_v52  ;;  %v153_v62 = vld [vmem:[#allocation4 + $0x8] sm:$0xff] }
 0x202   :  { %v150_v55 = vadd.f32 %v147_v53, %v142_v54 }
 0x204   :  { %v154_v61 = vsub.f32 %v150_v55, %v152_v59 }
 0x206   :  { %v156_v0 = vsel %vm19_vm1, %v154_v61, 0.0 }
 0x207   :  { %v210_v56 = vpop.eup %209 }
 0x208   :  { %v149_v57 = vmul.f32 0.6931472, %v210_v56 }
 0x20a   :  { %v151_v60 = vadd.f32 %v149_v57, %v143_v58 }
 0x20c   :  { %v155_v63 = vsub.f32 %v151_v60, %v153_v62 }
 0x20e   :  { %v157_v1 = vsel %vm19_vm1, %v155_v63, 0.0 }
 0x20f   :  { %v158_v2 = vadd.f32 %v157_v1, %v156_v0 }
 0x211   :  { %159 = vadd.xlane.f32.xlu0 %v158_v2 }
 0x284   :  { %v160_v3 = vpop.xlane.xlu0 %159 }
 0x285   :  { %v161_v4 = vrot.slane %v160_v3, 4 }
 0x287   :  { %v162_v5 = vadd.f32 %v161_v4, %v160_v3 }
 0x289   :  { %v163_v6 = vrot.slane %v162_v5, 2 }
 0x28b   :  { %v164_v7 = vadd.f32 %v163_v6, %v162_v5 }
 0x28d   :  { %v165_v8 = vrot.slane %v164_v7, 1 }
 0x28f   :  { %v166_v9 = vadd.f32 %v165_v8, %v164_v7 }
 0x291   :  { %191 = vpush %v166_v9 }
 0x2c2   :  { %s192_s0 = spop %191 }
 0x2c3   :  { %v168_v10 = vstv %s192_s0 }
 0x2c4   :  { %170 = vst [vmem:[%s269_s3] sm:$0xff] %v168_v10 }

</bundles_post_ra>
